<compile_context>
chip_gen: v7x
topology: tpu7x:2x2x1
jax: 0.10.0
libtpu: 0.0.40
codegen_flags: <defaults>
</compile_context>

<pallas_src>
import numpy as np
import jax
import jax.numpy as jnp
from jax import lax
from jax.experimental import pallas as pl
from jax.experimental.pallas import tpu as pltpu


# ----------------------------- kernel ---------------------------------------
def _conv_ps_kernel(x_ref, t_ref, b_ref, o_ref, xcat_ref):
    """Fused Conv2d(3x3, stride 1, pad 1) + PixelShuffle for NB images.

    x_ref   : (NB, Cin, H, W)     raw NCHW input block (no wrapper pad/transpose)
    t_ref   : (3*Cin*W, W*Cout)   dy-stacked, W-clipped banded conv weights,
                                  columns pre-permuted into pixel-shuffle order
    b_ref   : (1, W*Cout)         bias row (same column permutation)
    o_ref   : (NB, H, W*Cout)     lane-dense output rows
    xcat_ref: (NB*H, 3*Cin*W)     VMEM scratch; row (n,h) = [x[h-1] | x[h] | x[h+1]]
    """
    NB, Cin, H, W = x_ref.shape
    K = Cin * W

    # Zero the scratch every step: the two halo rows per image must be zero and
    # this is safe under megacore partitioning (each core owns its own scratch).
    xcat_ref[...] = jnp.zeros_like(xcat_ref)

    # Build the dy-stacked operand with shifted row windows loaded directly
    # from the ref (all offsets/extents are static Python ints).
    for n in range(NB):                       # static unroll, NB is small
        r0 = n * H
        for ci in range(Cin):
            c0 = ci * W
            # dy = -1 tap: output row h sees input row h-1 (row 0 stays zero).
            xcat_ref[r0 + 1:r0 + H, c0:c0 + W] = x_ref[n, ci, 0:H - 1, :]
            # dy = 0 tap.
            xcat_ref[r0:r0 + H, K + c0:K + c0 + W] = x_ref[n, ci, :, :]
            # dy = +1 tap: output row h sees input row h+1 (row H-1 stays zero).
            xcat_ref[r0:r0 + H - 1, 2 * K + c0:2 * K + c0 + W] = x_ref[n, ci, 1:H, :]

    # Single MXU matmul with f32 accumulation: (NB*H, 3K) @ (3K, W*Cout).
    acc = jnp.dot(xcat_ref[...], t_ref[...], preferred_element_type=jnp.float32)
    acc = acc + b_ref[...]                    # one broadcast over all rows
    o_ref[...] = acc.reshape(o_ref.shape).astype(o_ref.dtype)


# ------------------------ host-side weight prep ------------------------------
def build_banded_weight(weight, bias, *, width, scale_factor):
    """Precompute (once per weight, on the host) the dy-stacked banded conv
    weight with the pixel-shuffle column permutation folded in, plus the
    matching bias row.  Kept out of the jitted per-call path."""
    Cout, Cin, KH, KW = weight.shape
    assert (KH, KW) == (3, 3)
    r = scale_factor
    assert Cout % (r * r) == 0
    W = width
    K = Cin * W
    Nlane = W * Cout

    w_np = np.asarray(weight, dtype=np.float32)
    b_np = np.asarray(bias, dtype=np.float32)

    # Pixel-shuffled column index for conv output (cout, w):
    #   cout = c*r*r + i*r + j  ->  col = ((c*r + i)*W + w)*r + j
    cout_idx = np.arange(Cout)
    c, rem = np.divmod(cout_idx, r * r)
    i, j = np.divmod(rem, r)
    w_idx = np.arange(W)
    col_map = (((c[:, None] * r + i[:, None]) * W + w_idx[None, :]) * r
               + j[:, None])                                    # (Cout, W)

    # T[(dy, ci, wx), col(cout, w)] = weight[cout, ci, dy, dx] with wx = w+dx-1,
    # taps clipped at the image edges (this *is* the padding over W).
    T = np.zeros((3 * K, Nlane), dtype=np.float32)
    for dy in range(3):
        for dx in range(3):
            for w in range(W):
                wx = w + dx - 1
                if 0 <= wx < W:
                    for ci in range(Cin):
                        T[dy * K + ci * W + wx, col_map[:, w]] = w_np[:, ci, dy, dx]

    b_row = np.zeros((1, Nlane), dtype=np.float32)
    b_row[0, col_map.reshape(-1)] = np.repeat(b_np, W)
    return jnp.asarray(T), jnp.asarray(b_row)


# ----------------------------- wrapper ---------------------------------------
def _grid_layout(N):
    """(grid_steps, images_per_step).  v7x has 2 TensorCores -> keep >= 2
    parallel steps; v5e/v6e have 1 TC -> fold the batch into one step so the
    conv matmul runs with M = N*H rows and only one step of fixed overhead."""
    try:
        kind = jax.devices()[0].device_kind.lower()
    except Exception:
        kind = ""
    multi_tc = "7" in kind
    if multi_tc and N > 1:
        return N, 1
    return 1, N


def upsampling_block(x_nchw, T, b_row, scale_factor=2):
    """Conv2d(Cin, Cout, 3, stride=1, padding=1) followed by PixelShuffle(r).

    `T`/`b_row` come from build_banded_weight (precomputed once per weight)."""
    N, Cin, H, W = x_nchw.shape
    Nlane = T.shape[1]
    Cout = Nlane // W
    r = scale_factor
    C = Cout // (r * r)
    K = Cin * W
    G, NB = _grid_layout(N)

    conv_ps = pl.pallas_call(
        _conv_ps_kernel,
        out_shape=jax.ShapeDtypeStruct((N, H, Nlane), x_nchw.dtype),
        grid_spec=pltpu.PrefetchScalarGridSpec(
            num_scalar_prefetch=0,
            grid=(G,),
            in_specs=[
                pl.BlockSpec((NB, Cin, H, W), lambda g: (g, 0, 0, 0)),
                pl.BlockSpec((3 * K, Nlane), lambda g: (0, 0)),
                pl.BlockSpec((1, Nlane), lambda g: (0, 0)),
            ],
            out_specs=pl.BlockSpec((NB, H, Nlane), lambda g: (g, 0, 0)),
            scratch_shapes=[pltpu.VMEM((NB * H, 3 * K), jnp.float32)],
        ),
        compiler_params=pltpu.CompilerParams(
            dimension_semantics=("parallel",),
            vmem_limit_bytes=32 * 1024 * 1024,
        ),
    )(x_nchw, T, b_row)

    # Single coarse regroup to NCHW (contiguous W*r chunks survive):
    # conv_ps[n, h, ((c*r+i)*W + w)*r + j] == pixel_shuffle(conv)[n, c, h*r+i, w*r+j]
    y = conv_ps.reshape(N, H, C, r, W * r)
    y = jnp.transpose(y, (0, 2, 1, 3, 4))
    return y.reshape(N, C, H * r, W * r)


# ----------------------------- reference ------------------------------------
def _pixel_shuffle_ref(x_nchw, r):
    N, Crr, H, W = x_nchw.shape
    C = Crr // (r * r)
    y = x_nchw.reshape(N, C, r, r, H, W)
    y = jnp.transpose(y, (0, 1, 4, 2, 5, 3))
    return y.reshape(N, C, H * r, W * r)


def _reference(x_nchw, weight, bias, scale_factor=2):
    y = lax.conv_general_dilated(
        x_nchw, weight, window_strides=(1, 1), padding=((1, 1), (1, 1)),
        dimension_numbers=("NCHW", "OIHW", "NCHW"))
    y = y + bias.reshape(1, -1, 1, 1)
    return _pixel_shuffle_ref(y, scale_factor)


if __name__ == "__main__":
    key = jax.random.PRNGKey(0)
    k_x, k_w, k_b = jax.random.split(key, 3)

    N, Cin, H, W = 2, 4, 16, 16
    Cout = 8                        # must be divisible by scale_factor^2 = 4
    r = 2

    x = jax.random.normal(k_x, (N, Cin, H, W), dtype=jnp.float32)
    weight = 0.1 * jax.random.normal(k_w, (Cout, Cin, 3, 3), dtype=jnp.float32)
    bias = 0.1 * jax.random.normal(k_b, (Cout,), dtype=jnp.float32)

    # Hoisted weight prep: done once per weight, outside the jitted hot path.
    T, b_row = build_banded_weight(weight, bias, width=W, scale_factor=r)

    fn = jax.jit(lambda a, t, b: upsampling_block(a, t, b, scale_factor=r))
    out = jax.block_until_ready(fn(x, T, b_row))

    ref = jax.block_until_ready(_reference(x, weight, bias, scale_factor=r))
    assert out.shape == (N, Cout // (r * r), H * r, W * r), out.shape
    assert jnp.allclose(out, ref, atol=1e-4, rtol=1e-4), "mismatch vs reference"

    print("KERNEL_OK")
</pallas_src>

<mosaic_0001>
module attributes {stable_mosaic.version = 11 : i64} {
  func.func @_conv_ps_kernel(%arg0: i32, %arg1: memref<2x4x16x16xf32, #tpu.memory_space<vmem>>, %arg2: memref<192x128xf32, #tpu.memory_space<vmem>>, %arg3: memref<1x128xf32, #tpu.memory_space<vmem>>, %arg4: memref<2x16x128xf32, #tpu.memory_space<vmem>>, %arg5: memref<32x192xf32, #tpu.memory_space<vmem>>) attributes {dimension_semantics = [#tpu.dimension_semantics<parallel>], iteration_bounds = array<i64: 1>, scalar_prefetch = 0 : i64, scratch_operands = 1 : i64, tpu.core_type = #tpu.core_type<tc>, window_params = [{transform_indices = @transform_0, window_bounds = array<i64: 2, 4, 16, 16>}, {pipeline_mode = #tpu.pipeline_mode<synchronous>, transform_indices = @transform_1, window_bounds = array<i64: 192, 128>}, {pipeline_mode = #tpu.pipeline_mode<synchronous>, transform_indices = @transform_2, window_bounds = array<i64: 1, 128>}, {transform_indices = @transform_3, window_bounds = array<i64: 2, 16, 128>}]} {
    %cst = arith.constant 0.000000e+00 : f32
    %0 = vector.broadcast %cst : f32 to vector<32x192xf32>
    %c0 = arith.constant 0 : index
    %c0_0 = arith.constant 0 : index
    %1 = vector.load %arg5[%c0, %c0_0] : memref<32x192xf32, #tpu.memory_space<vmem>>, vector<32x192xf32>
    tpu.vector_store %arg5[%c0, %c0_0], %0 {strides = array<i32>} : memref<32x192xf32, #tpu.memory_space<vmem>>, vector<32x192xf32>,
    %c0_1 = arith.constant 0 : index
    %c0_2 = arith.constant 0 : index
    %c0_3 = arith.constant 0 : index
    %c0_4 = arith.constant 0 : index
    %2 = vector.load %arg1[%c0_1, %c0_2, %c0_3, %c0_4] : memref<2x4x16x16xf32, #tpu.memory_space<vmem>>, vector<1x1x15x16xf32>
    %3 = vector.shape_cast %2 : vector<1x1x15x16xf32> to vector<15x16xf32>
    %c1 = arith.constant 1 : index
    %c0_5 = arith.constant 0 : index
    %4 = vector.load %arg5[%c1, %c0_5] : memref<32x192xf32, #tpu.memory_space<vmem>>, vector<15x16xf32>
    tpu.vector_store %arg5[%c1, %c0_5], %3 {strides = array<i32>} : memref<32x192xf32, #tpu.memory_space<vmem>>, vector<15x16xf32>,
    %c0_6 = arith.constant 0 : index
    %c0_7 = arith.constant 0 : index
    %c0_8 = arith.constant 0 : index
    %c0_9 = arith.constant 0 : index
    %5 = vector.load %arg1[%c0_6, %c0_7, %c0_8, %c0_9] : memref<2x4x16x16xf32, #tpu.memory_space<vmem>>, vector<1x1x16x16xf32>
    %6 = vector.shape_cast %5 : vector<1x1x16x16xf32> to vector<16x16xf32>
    %c0_10 = arith.constant 0 : index
    %c64 = arith.constant 64 : index
    %7 = vector.load %arg5[%c0_10, %c64] : memref<32x192xf32, #tpu.memory_space<vmem>>, vector<16x16xf32>
    tpu.vector_store %arg5[%c0_10, %c64], %6 {strides = array<i32>} : memref<32x192xf32, #tpu.memory_space<vmem>>, vector<16x16xf32>,
    %c0_11 = arith.constant 0 : index
    %c0_12 = arith.constant 0 : index
    %c1_13 = arith.constant 1 : index
    %c0_14 = arith.constant 0 : index
    %8 = vector.load %arg1[%c0_11, %c0_12, %c1_13, %c0_14] : memref<2x4x16x16xf32, #tpu.memory_space<vmem>>, vector<1x1x15x16xf32>
    %9 = vector.shape_cast %8 : vector<1x1x15x16xf32> to vector<15x16xf32>
    %c0_15 = arith.constant 0 : index
    %c128 = arith.constant 128 : index
    %10 = vector.load %arg5[%c0_15, %c128] : memref<32x192xf32, #tpu.memory_space<vmem>>, vector<15x16xf32>
    tpu.vector_store %arg5[%c0_15, %c128], %9 {strides = array<i32>} : memref<32x192xf32, #tpu.memory_space<vmem>>, vector<15x16xf32>,
    %c0_16 = arith.constant 0 : index
    %c1_17 = arith.constant 1 : index
    %c0_18 = arith.constant 0 : index
    %c0_19 = arith.constant 0 : index
    %11 = vector.load %arg1[%c0_16, %c1_17, %c0_18, %c0_19] : memref<2x4x16x16xf32, #tpu.memory_space<vmem>>, vector<1x1x15x16xf32>
    %12 = vector.shape_cast %11 : vector<1x1x15x16xf32> to vector<15x16xf32>
    %c1_20 = arith.constant 1 : index
    %c16 = arith.constant 16 : index
    %13 = vector.load %arg5[%c1_20, %c16] : memref<32x192xf32, #tpu.memory_space<vmem>>, vector<15x16xf32>
    tpu.vector_store %arg5[%c1_20, %c16], %12 {strides = array<i32>} : memref<32x192xf32, #tpu.memory_space<vmem>>, vector<15x16xf32>,
    %c0_21 = arith.constant 0 : index
    %c1_22 = arith.constant 1 : index
    %c0_23 = arith.constant 0 : index
    %c0_24 = arith.constant 0 : index
    %14 = vector.load %arg1[%c0_21, %c1_22, %c0_23, %c0_24] : memref<2x4x16x16xf32, #tpu.memory_space<vmem>>, vector<1x1x16x16xf32>
    %15 = vector.shape_cast %14 : vector<1x1x16x16xf32> to vector<16x16xf32>
    %c0_25 = arith.constant 0 : index
    %c80 = arith.constant 80 : index
    %16 = vector.load %arg5[%c0_25, %c80] : memref<32x192xf32, #tpu.memory_space<vmem>>, vector<16x16xf32>
    tpu.vector_store %arg5[%c0_25, %c80], %15 {strides = array<i32>} : memref<32x192xf32, #tpu.memory_space<vmem>>, vector<16x16xf32>,
    %c0_26 = arith.constant 0 : index
    %c1_27 = arith.constant 1 : index
    %c1_28 = arith.constant 1 : index
    %c0_29 = arith.constant 0 : index
    %17 = vector.load %arg1[%c0_26, %c1_27, %c1_28, %c0_29] : memref<2x4x16x16xf32, #tpu.memory_space<vmem>>, vector<1x1x15x16xf32>
    %18 = vector.shape_cast %17 : vector<1x1x15x16xf32> to vector<15x16xf32>
    %c0_30 = arith.constant 0 : index
    %c144 = arith.constant 144 : index
    %19 = vector.load %arg5[%c0_30, %c144] : memref<32x192xf32, #tpu.memory_space<vmem>>, vector<15x16xf32>
    tpu.vector_store %arg5[%c0_30, %c144], %18 {strides = array<i32>} : memref<32x192xf32, #tpu.memory_space<vmem>>, vector<15x16xf32>,
    %c0_31 = arith.constant 0 : index
    %c2 = arith.constant 2 : index
    %c0_32 = arith.constant 0 : index
    %c0_33 = arith.constant 0 : index
    %20 = vector.load %arg1[%c0_31, %c2, %c0_32, %c0_33] : memref<2x4x16x16xf32, #tpu.memory_space<vmem>>, vector<1x1x15x16xf32>
    %21 = vector.shape_cast %20 : vector<1x1x15x16xf32> to vector<15x16xf32>
    %c1_34 = arith.constant 1 : index
    %c32 = arith.constant 32 : index
    %22 = vector.load %arg5[%c1_34, %c32] : memref<32x192xf32, #tpu.memory_space<vmem>>, vector<15x16xf32>
    tpu.vector_store %arg5[%c1_34, %c32], %21 {strides = array<i32>} : memref<32x192xf32, #tpu.memory_space<vmem>>, vector<15x16xf32>,
    %c0_35 = arith.constant 0 : index
    %c2_36 = arith.constant 2 : index
    %c0_37 = arith.constant 0 : index
    %c0_38 = arith.constant 0 : index
    %23 = vector.load %arg1[%c0_35, %c2_36, %c0_37, %c0_38] : memref<2x4x16x16xf32, #tpu.memory_space<vmem>>, vector<1x1x16x16xf32>
    %24 = vector.shape_cast %23 : vector<1x1x16x16xf32> to vector<16x16xf32>
    %c0_39 = arith.constant 0 : index
    %c96 = arith.constant 96 : index
    %25 = vector.load %arg5[%c0_39, %c96] : memref<32x192xf32, #tpu.memory_space<vmem>>, vector<16x16xf32>
    tpu.vector_store %arg5[%c0_39, %c96], %24 {strides = array<i32>} : memref<32x192xf32, #tpu.memory_space<vmem>>, vector<16x16xf32>,
    %c0_40 = arith.constant 0 : index
    %c2_41 = arith.constant 2 : index
    %c1_42 = arith.constant 1 : index
    %c0_43 = arith.constant 0 : index
    %26 = vector.load %arg1[%c0_40, %c2_41, %c1_42, %c0_43] : memref<2x4x16x16xf32, #tpu.memory_space<vmem>>, vector<1x1x15x16xf32>
    %27 = vector.shape_cast %26 : vector<1x1x15x16xf32> to vector<15x16xf32>
    %c0_44 = arith.constant 0 : index
    %c160 = arith.constant 160 : index
    %28 = vector.load %arg5[%c0_44, %c160] : memref<32x192xf32, #tpu.memory_space<vmem>>, vector<15x16xf32>
    tpu.vector_store %arg5[%c0_44, %c160], %27 {strides = array<i32>} : memref<32x192xf32, #tpu.memory_space<vmem>>, vector<15x16xf32>,
    %c0_45 = arith.constant 0 : index
    %c3 = arith.constant 3 : index
    %c0_46 = arith.constant 0 : index
    %c0_47 = arith.constant 0 : index
    %29 = vector.load %arg1[%c0_45, %c3, %c0_46, %c0_47] : memref<2x4x16x16xf32, #tpu.memory_space<vmem>>, vector<1x1x15x16xf32>
    %30 = vector.shape_cast %29 : vector<1x1x15x16xf32> to vector<15x16xf32>
    %c1_48 = arith.constant 1 : index
    %c48 = arith.constant 48 : index
    %31 = vector.load %arg5[%c1_48, %c48] : memref<32x192xf32, #tpu.memory_space<vmem>>, vector<15x16xf32>
    tpu.vector_store %arg5[%c1_48, %c48], %30 {strides = array<i32>} : memref<32x192xf32, #tpu.memory_space<vmem>>, vector<15x16xf32>,
    %c0_49 = arith.constant 0 : index
    %c3_50 = arith.constant 3 : index
    %c0_51 = arith.constant 0 : index
    %c0_52 = arith.constant 0 : index
    %32 = vector.load %arg1[%c0_49, %c3_50, %c0_51, %c0_52] : memref<2x4x16x16xf32, #tpu.memory_space<vmem>>, vector<1x1x16x16xf32>
    %33 = vector.shape_cast %32 : vector<1x1x16x16xf32> to vector<16x16xf32>
    %c0_53 = arith.constant 0 : index
    %c112 = arith.constant 112 : index
    %34 = vector.load %arg5[%c0_53, %c112] : memref<32x192xf32, #tpu.memory_space<vmem>>, vector<16x16xf32>
    tpu.vector_store %arg5[%c0_53, %c112], %33 {strides = array<i32>} : memref<32x192xf32, #tpu.memory_space<vmem>>, vector<16x16xf32>,
    %c0_54 = arith.constant 0 : index
    %c3_55 = arith.constant 3 : index
    %c1_56 = arith.constant 1 : index
    %c0_57 = arith.constant 0 : index
    %35 = vector.load %arg1[%c0_54, %c3_55, %c1_56, %c0_57] : memref<2x4x16x16xf32, #tpu.memory_space<vmem>>, vector<1x1x15x16xf32>
    %36 = vector.shape_cast %35 : vector<1x1x15x16xf32> to vector<15x16xf32>
    %c0_58 = arith.constant 0 : index
    %c176 = arith.constant 176 : index
    %37 = vector.load %arg5[%c0_58, %c176] : memref<32x192xf32, #tpu.memory_space<vmem>>, vector<15x16xf32>
    tpu.vector_store %arg5[%c0_58, %c176], %36 {strides = array<i32>} : memref<32x192xf32, #tpu.memory_space<vmem>>, vector<15x16xf32>,
    %c1_59 = arith.constant 1 : index
    %c0_60 = arith.constant 0 : index
    %c0_61 = arith.constant 0 : index
    %c0_62 = arith.constant 0 : index
    %38 = vector.load %arg1[%c1_59, %c0_60, %c0_61, %c0_62] : memref<2x4x16x16xf32, #tpu.memory_space<vmem>>, vector<1x1x15x16xf32>
    %39 = vector.shape_cast %38 : vector<1x1x15x16xf32> to vector<15x16xf32>
    %c17 = arith.constant 17 : index
    %c0_63 = arith.constant 0 : index
    %40 = vector.load %arg5[%c17, %c0_63] : memref<32x192xf32, #tpu.memory_space<vmem>>, vector<15x16xf32>
    tpu.vector_store %arg5[%c17, %c0_63], %39 {strides = array<i32>} : memref<32x192xf32, #tpu.memory_space<vmem>>, vector<15x16xf32>,
    %c1_64 = arith.constant 1 : index
    %c0_65 = arith.constant 0 : index
    %c0_66 = arith.constant 0 : index
    %c0_67 = arith.constant 0 : index
    %41 = vector.load %arg1[%c1_64, %c0_65, %c0_66, %c0_67] : memref<2x4x16x16xf32, #tpu.memory_space<vmem>>, vector<1x1x16x16xf32>
    %42 = vector.shape_cast %41 : vector<1x1x16x16xf32> to vector<16x16xf32>
    %c16_68 = arith.constant 16 : index
    %c64_69 = arith.constant 64 : index
    %43 = vector.load %arg5[%c16_68, %c64_69] : memref<32x192xf32, #tpu.memory_space<vmem>>, vector<16x16xf32>
    tpu.vector_store %arg5[%c16_68, %c64_69], %42 {strides = array<i32>} : memref<32x192xf32, #tpu.memory_space<vmem>>, vector<16x16xf32>,
    %c1_70 = arith.constant 1 : index
    %c0_71 = arith.constant 0 : index
    %c1_72 = arith.constant 1 : index
    %c0_73 = arith.constant 0 : index
    %44 = vector.load %arg1[%c1_70, %c0_71, %c1_72, %c0_73] : memref<2x4x16x16xf32, #tpu.memory_space<vmem>>, vector<1x1x15x16xf32>
    %45 = vector.shape_cast %44 : vector<1x1x15x16xf32> to vector<15x16xf32>
    %c16_74 = arith.constant 16 : index
    %c128_75 = arith.constant 128 : index
    %46 = vector.load %arg5[%c16_74, %c128_75] : memref<32x192xf32, #tpu.memory_space<vmem>>, vector<15x16xf32>
    tpu.vector_store %arg5[%c16_74, %c128_75], %45 {strides = array<i32>} : memref<32x192xf32, #tpu.memory_space<vmem>>, vector<15x16xf32>,
    %c1_76 = arith.constant 1 : index
    %c1_77 = arith.constant 1 : index
    %c0_78 = arith.constant 0 : index
    %c0_79 = arith.constant 0 : index
    %47 = vector.load %arg1[%c1_76, %c1_77, %c0_78, %c0_79] : memref<2x4x16x16xf32, #tpu.memory_space<vmem>>, vector<1x1x15x16xf32>
    %48 = vector.shape_cast %47 : vector<1x1x15x16xf32> to vector<15x16xf32>
    %c17_80 = arith.constant 17 : index
    %c16_81 = arith.constant 16 : index
    %49 = vector.load %arg5[%c17_80, %c16_81] : memref<32x192xf32, #tpu.memory_space<vmem>>, vector<15x16xf32>
    tpu.vector_store %arg5[%c17_80, %c16_81], %48 {strides = array<i32>} : memref<32x192xf32, #tpu.memory_space<vmem>>, vector<15x16xf32>,
    %c1_82 = arith.constant 1 : index
    %c1_83 = arith.constant 1 : index
    %c0_84 = arith.constant 0 : index
    %c0_85 = arith.constant 0 : index
    %50 = vector.load %arg1[%c1_82, %c1_83, %c0_84, %c0_85] : memref<2x4x16x16xf32, #tpu.memory_space<vmem>>, vector<1x1x16x16xf32>
    %51 = vector.shape_cast %50 : vector<1x1x16x16xf32> to vector<16x16xf32>
    %c16_86 = arith.constant 16 : index
    %c80_87 = arith.constant 80 : index
    %52 = vector.load %arg5[%c16_86, %c80_87] : memref<32x192xf32, #tpu.memory_space<vmem>>, vector<16x16xf32>
    tpu.vector_store %arg5[%c16_86, %c80_87], %51 {strides = array<i32>} : memref<32x192xf32, #tpu.memory_space<vmem>>, vector<16x16xf32>,
    %c1_88 = arith.constant 1 : index
    %c1_89 = arith.constant 1 : index
    %c1_90 = arith.constant 1 : index
    %c0_91 = arith.constant 0 : index
    %53 = vector.load %arg1[%c1_88, %c1_89, %c1_90, %c0_91] : memref<2x4x16x16xf32, #tpu.memory_space<vmem>>, vector<1x1x15x16xf32>
    %54 = vector.shape_cast %53 : vector<1x1x15x16xf32> to vector<15x16xf32>
    %c16_92 = arith.constant 16 : index
    %c144_93 = arith.constant 144 : index
    %55 = vector.load %arg5[%c16_92, %c144_93] : memref<32x192xf32, #tpu.memory_space<vmem>>, vector<15x16xf32>
    tpu.vector_store %arg5[%c16_92, %c144_93], %54 {strides = array<i32>} : memref<32x192xf32, #tpu.memory_space<vmem>>, vector<15x16xf32>,
    %c1_94 = arith.constant 1 : index
    %c2_95 = arith.constant 2 : index
    %c0_96 = arith.constant 0 : index
    %c0_97 = arith.constant 0 : index
    %56 = vector.load %arg1[%c1_94, %c2_95, %c0_96, %c0_97] : memref<2x4x16x16xf32, #tpu.memory_space<vmem>>, vector<1x1x15x16xf32>
    %57 = vector.shape_cast %56 : vector<1x1x15x16xf32> to vector<15x16xf32>
    %c17_98 = arith.constant 17 : index
    %c32_99 = arith.constant 32 : index
    %58 = vector.load %arg5[%c17_98, %c32_99] : memref<32x192xf32, #tpu.memory_space<vmem>>, vector<15x16xf32>
    tpu.vector_store %arg5[%c17_98, %c32_99], %57 {strides = array<i32>} : memref<32x192xf32, #tpu.memory_space<vmem>>, vector<15x16xf32>,
    %c1_100 = arith.constant 1 : index
    %c2_101 = arith.constant 2 : index
    %c0_102 = arith.constant 0 : index
    %c0_103 = arith.constant 0 : index
    %59 = vector.load %arg1[%c1_100, %c2_101, %c0_102, %c0_103] : memref<2x4x16x16xf32, #tpu.memory_space<vmem>>, vector<1x1x16x16xf32>
    %60 = vector.shape_cast %59 : vector<1x1x16x16xf32> to vector<16x16xf32>
    %c16_104 = arith.constant 16 : index
    %c96_105 = arith.constant 96 : index
    %61 = vector.load %arg5[%c16_104, %c96_105] : memref<32x192xf32, #tpu.memory_space<vmem>>, vector<16x16xf32>
    tpu.vector_store %arg5[%c16_104, %c96_105], %60 {strides = array<i32>} : memref<32x192xf32, #tpu.memory_space<vmem>>, vector<16x16xf32>,
    %c1_106 = arith.constant 1 : index
    %c2_107 = arith.constant 2 : index
    %c1_108 = arith.constant 1 : index
    %c0_109 = arith.constant 0 : index
    %62 = vector.load %arg1[%c1_106, %c2_107, %c1_108, %c0_109] : memref<2x4x16x16xf32, #tpu.memory_space<vmem>>, vector<1x1x15x16xf32>
    %63 = vector.shape_cast %62 : vector<1x1x15x16xf32> to vector<15x16xf32>
    %c16_110 = arith.constant 16 : index
    %c160_111 = arith.constant 160 : index
    %64 = vector.load %arg5[%c16_110, %c160_111] : memref<32x192xf32, #tpu.memory_space<vmem>>, vector<15x16xf32>
    tpu.vector_store %arg5[%c16_110, %c160_111], %63 {strides = array<i32>} : memref<32x192xf32, #tpu.memory_space<vmem>>, vector<15x16xf32>,
    %c1_112 = arith.constant 1 : index
    %c3_113 = arith.constant 3 : index
    %c0_114 = arith.constant 0 : index
    %c0_115 = arith.constant 0 : index
    %65 = vector.load %arg1[%c1_112, %c3_113, %c0_114, %c0_115] : memref<2x4x16x16xf32, #tpu.memory_space<vmem>>, vector<1x1x15x16xf32>
    %66 = vector.shape_cast %65 : vector<1x1x15x16xf32> to vector<15x16xf32>
    %c17_116 = arith.constant 17 : index
    %c48_117 = arith.constant 48 : index
    %67 = vector.load %arg5[%c17_116, %c48_117] : memref<32x192xf32, #tpu.memory_space<vmem>>, vector<15x16xf32>
    tpu.vector_store %arg5[%c17_116, %c48_117], %66 {strides = array<i32>} : memref<32x192xf32, #tpu.memory_space<vmem>>, vector<15x16xf32>,
    %c1_118 = arith.constant 1 : index
    %c3_119 = arith.constant 3 : index
    %c0_120 = arith.constant 0 : index
    %c0_121 = arith.constant 0 : index
    %68 = vector.load %arg1[%c1_118, %c3_119, %c0_120, %c0_121] : memref<2x4x16x16xf32, #tpu.memory_space<vmem>>, vector<1x1x16x16xf32>
    %69 = vector.shape_cast %68 : vector<1x1x16x16xf32> to vector<16x16xf32>
    %c16_122 = arith.constant 16 : index
    %c112_123 = arith.constant 112 : index
    %70 = vector.load %arg5[%c16_122, %c112_123] : memref<32x192xf32, #tpu.memory_space<vmem>>, vector<16x16xf32>
    tpu.vector_store %arg5[%c16_122, %c112_123], %69 {strides = array<i32>} : memref<32x192xf32, #tpu.memory_space<vmem>>, vector<16x16xf32>,
    %c1_124 = arith.constant 1 : index
    %c3_125 = arith.constant 3 : index
    %c1_126 = arith.constant 1 : index
    %c0_127 = arith.constant 0 : index
    %71 = vector.load %arg1[%c1_124, %c3_125, %c1_126, %c0_127] : memref<2x4x16x16xf32, #tpu.memory_space<vmem>>, vector<1x1x15x16xf32>
    %72 = vector.shape_cast %71 : vector<1x1x15x16xf32> to vector<15x16xf32>
    %c16_128 = arith.constant 16 : index
    %c176_129 = arith.constant 176 : index
    %73 = vector.load %arg5[%c16_128, %c176_129] : memref<32x192xf32, #tpu.memory_space<vmem>>, vector<15x16xf32>
    tpu.vector_store %arg5[%c16_128, %c176_129], %72 {strides = array<i32>} : memref<32x192xf32, #tpu.memory_space<vmem>>, vector<15x16xf32>,
    %c0_130 = arith.constant 0 : index
    %c0_131 = arith.constant 0 : index
    %74 = vector.load %arg5[%c0_130, %c0_131] : memref<32x192xf32, #tpu.memory_space<vmem>>, vector<32x192xf32>
    %c0_132 = arith.constant 0 : index
    %c0_133 = arith.constant 0 : index
    %75 = vector.load %arg2[%c0_132, %c0_133] : memref<192x128xf32, #tpu.memory_space<vmem>>, vector<192x128xf32>
    %cst_134 = arith.constant dense<0.000000e+00> : vector<32x128xf32>
    %76 = tpu.matmul %74, %75, %cst_134 {dimension_numbers = #tpu.dot_dimension_numbers<[1], [0], [0], [1], [0, 0, 1, 1], [], []>} : vector<32x192xf32>, vector<192x128xf32>, vector<32x128xf32> -> vector<32x128xf32>
    %c0_135 = arith.constant 0 : index
    %c0_136 = arith.constant 0 : index
    %77 = vector.load %arg3[%c0_135, %c0_136] : memref<1x128xf32, #tpu.memory_space<vmem>>, vector<1x128xf32>
    %78 = vector.broadcast %77 : vector<1x128xf32> to vector<32x128xf32>
    %79 = arith.addf %76, %78 : vector<32x128xf32>
    %80 = vector.shape_cast %79 : vector<32x128xf32> to vector<2x16x128xf32>
    %c0_137 = arith.constant 0 : index
    %c0_138 = arith.constant 0 : index
    %c0_139 = arith.constant 0 : index
    %81 = vector.load %arg4[%c0_137, %c0_138, %c0_139] : memref<2x16x128xf32, #tpu.memory_space<vmem>>, vector<2x16x128xf32>
    tpu.vector_store %arg4[%c0_137, %c0_138, %c0_139], %80 {strides = array<i32>} : memref<2x16x128xf32, #tpu.memory_space<vmem>>, vector<2x16x128xf32>,
    return
  }
  func.func @transform_0(%arg0: i32) -> (i32, i32, i32, i32) {
    %c0_i32 = arith.constant 0 : i32
    %c0_i32_0 = arith.constant 0 : i32
    %c0_i32_1 = arith.constant 0 : i32
    %c0_i32_2 = arith.constant 0 : i32
    return %arg0, %c0_i32, %c0_i32_0, %c0_i32_1 : i32, i32, i32, i32
  }
  func.func @transform_1(%arg0: i32) -> (i32, i32) {
    %c0_i32 = arith.constant 0 : i32
    %c0_i32_0 = arith.constant 0 : i32
    %c0_i32_1 = arith.constant 0 : i32
    return %c0_i32, %c0_i32_0 : i32, i32
  }
  func.func @transform_2(%arg0: i32) -> (i32, i32) {
    %c0_i32 = arith.constant 0 : i32
    %c0_i32_0 = arith.constant 0 : i32
    %c0_i32_1 = arith.constant 0 : i32
    return %c0_i32, %c0_i32_0 : i32, i32
  }
  func.func @transform_3(%arg0: i32) -> (i32, i32, i32) {
    %c0_i32 = arith.constant 0 : i32
    %c0_i32_0 = arith.constant 0 : i32
    %c0_i32_1 = arith.constant 0 : i32
    return %arg0, %c0_i32, %c0_i32_0 : i32, i32, i32
  }
}

</mosaic_0001>

<bundles_post_ra>
// kernel: _lambda_.1
= control target key start
LH: loop header
LB: loop body
LE: loop exit
PB: predicated region body
PF: predicated region fallthrough
CT: control target
= control target key end

     0   :  { %8 = vsyncpa [#allocation4], 0  ;;  %s869_s0 = inlined_call_operand.hbm [shape: f32[2,4,16,16], index: 0, kind: input, shape index: {}]   ;;  %s870_s1 = inlined_call_operand.hbm [shape: f32[192,128], index: 1, kind: input, shape index: {}]   ;;  %s871_s2 = inlined_call_operand.vmem [shape: f32[1,128], index: 2, kind: input, shape index: {}]   ;;  %s872_s3 = inlined_call_operand.vmem [shape: f32[2,16,128], index: 3, kind: output, shape index: {}]  }
   0x1   :  { %9 = vsyncpa [#allocation6], 0  ;;  %s635_s12 = smov [#allocation3]   ;;  %s587_s16 = scalar_lea.hbm %s869_s0, 2048 }
   0x2   :  { %s15_s13 = sshll.u32 %s635_s12, 4  ;;  %p588_p0 = scmp.ne.s32.totalorder %s869_s0, %s587_s16  ;;  %s16_s13 = int_to_ptr.vmem [resolvable:$true] %s15_s13 }
   0x3   :  { %p591_p1 = scmp.lt.u32.totalorder %s587_s16, %s869_s0 }
   0x5   :  { %p593_p2 = pnand %p591_p1, %p588_p0 }
   0x7   :  { %596 = shalt.err (!%p593_p2)
}
   0x8   :  { %s597_s21 = scalar_lea.vmem %s16_s13, 2048  ;;  %p602_p4 = scmp.lt.s32.totalorder %s16_s13, %s16_s13 }
   0x9   :  { %p598_p3 = scmp.ne.s32.totalorder %s16_s13, %s597_s21  ;;  %p603_p5 = scmp.lt.s32.totalorder %s597_s21, %s597_s21 }
   0xb   :  { %p604_p6 = por %p603_p5, %p602_p4 }
   0xd   :  { %p605_p7 = pnand %p604_p6, %p598_p3 }
   0xf   :  { %608 = shalt.err (!%p605_p7)
}
  0x10   :  { %s636_s22 = smov 128   ;;  %s637_s23 = smov 8  }
  0x11   :  { %21 = dma.hbm_to_vmem [thread:$0]  %s869_s0, 2048, %s16_s13, [#allocation4], %s636_s22, %s636_s22, %s637_s23  }
  0x12   :  { %s638_s26 = smov [#allocation5]   ;;  %s609_s30 = scalar_lea.hbm %s870_s1, 3072 }
  0x13   :  { %s27_s27 = sshll.u32 %s638_s26, 4  ;;  %p610_p8 = scmp.ne.s32.totalorder %s870_s1, %s609_s30  ;;  %s28_s27 = int_to_ptr.vmem [resolvable:$true] %s27_s27 }
  0x14   :  { %p613_p9 = scmp.lt.u32.totalorder %s609_s30, %s870_s1 }
  0x16   :  { %p615_p10 = pnand %p613_p9, %p610_p8 }
  0x18   :  { %618 = shalt.err (!%p615_p10)
}
  0x19   :  { %s619_s8 = scalar_lea.vmem %s28_s27, 3072  ;;  %p624_p12 = scmp.lt.s32.totalorder %s28_s27, %s28_s27 }
  0x1a   :  { %p620_p11 = scmp.ne.s32.totalorder %s28_s27, %s619_s8  ;;  %p625_p13 = scmp.lt.s32.totalorder %s619_s8, %s619_s8 }
  0x1c   :  { %p626_p0 = por %p625_p13, %p624_p12 }
  0x1e   :  { %p627_p1 = pnand %p626_p0, %p620_p11 }
  0x20   :  { %630 = shalt.err (!%p627_p1)
}
  0x21   :  { %33 = dma.hbm_to_vmem [thread:$0]  %s870_s1, 3072, %s28_s27, [#allocation6], %s636_s22, %s636_s22, %s637_s23  }
  0x22   :  { %631 = dma.done.wait [#allocation4], 2048  }
  0x23   :  { %632 = vsyncadd [#allocation4], 4294965248 }
  0x24   :  { %633 = dma.done.wait [#allocation6], 3072  }
  0x25   :  { %634 = vsyncadd [#allocation6], 4294964224  ;;  %v639_v0 = vmov 0.0   ;;  %v640_v1 = vmov 0.0|0.0   ;;  %vm43_vm0 = vcmask 523264   ;;  %v698_v2 = vld [vmem:[#allocation3 + $0x50] sm:$0xff] }
  0x26   :  { %42 = vst [vmem:[#allocation2] sm:$0xff] %v639_v0  ;;  %45 = vst [vmem:[#allocation2 + $0x10] sm:$0xff] %v639_v0  ;;  %514 = vmatprep.subr.bf16.mxu0 %v640_v1  ;;  %550 = vmatprep.subr.bf16.mxu1 %v640_v1  ;;  %v65_v3 = vld [vmem:[#allocation3] sm:$0xff]  ;;  %v700_v4 = vld [vmem:[#allocation3 + $0x10] sm:$0xff]  ;;  %vm61_vm1 = vcmask 130049   ;;  %s641_s1 = smov 80  }
  0x27   :  { %47 = vst [vmem:[#allocation2 + $0x20] sm:$0xff] %v639_v0  ;;  %49 = vst [vmem:[#allocation2 + $0x30] sm:$0xff] %v639_v0  ;;  %263 = vrot.lane.b32.xlu1 %v698_v2, %s641_s1  ;;  %s642_s10 = smov 64   ;;  %v88_v5 = vrot.slane %v700_v4, 7  ;;  %v227_v6 = vld [vmem:[#allocation3 + $0x40] sm:$0xff]  ;;  %v56_v7 = vrot.slane %v65_v3, 7 }
  0x28   :  { %44 = vst.msk [vmem:[#allocation2 + $0x8] sm:$0xff] %vm43_vm0, %v639_v0  ;;  %46 = vst.msk [vmem:[#allocation2 + $0x18] sm:$0xff] %vm43_vm0, %v639_v0  ;;  %69 = vrot.lane.b32.xlu0 %v65_v3, %s642_s10  ;;  %v220_v8 = vrot.slane %v227_v6, 7  ;;  %s643_s11 = smov 16   ;;  %v248_v9 = vrot.slane %v698_v2, 7  ;;  %v711_v10 = vld [vmem:[#allocation3 + $0x20] sm:$0xff] }
  0x29   :  { %48 = vst.msk [vmem:[#allocation2 + $0x28] sm:$0xff] %vm43_vm0, %v639_v0  ;;  %50 = vst.msk [vmem:[#allocation2 + $0x38] sm:$0xff] %vm43_vm0, %v639_v0  ;;  %v132_v11 = vrot.slane %v711_v10, 7  ;;  %v114_v12 = vld [vmem:[#allocation3 + $0x11] sm:$0xff]  ;;  %v719_v13 = vld [vmem:[#allocation3 + $0x60] sm:$0xff]  ;;  %vm63_vm2 = vcmask 130048  }
  0x2a   :  { %62 = vst.msk [vmem:[#allocation2] sm:$0xfe] %vm61_vm1, %v56_v7  ;;  %225 = vst.msk [vmem:[#allocation2 + $0x20] sm:$0xfe] %vm61_vm1, %v220_v8  ;;  %v371_v14 = vld [vmem:[#allocation5] sm:$0xff]  ;;  %v372_v15 = vld [vmem:[#allocation5 + $0x8] sm:$0xff] }
  0x2b   :  { %91 = vrot.lane.b32.xlu1 %v88_v5, %s643_s11  ;;  %v515_v16 = vpack.c.bf16 %v372_v15, %v371_v14  ;;  %v373_v17 = vld [vmem:[#allocation5 + $0x10] sm:$0xff]  ;;  %v374_v18 = vld [vmem:[#allocation5 + $0x18] sm:$0xff]  ;;  %v78_v19 = vld [vmem:[#allocation3 + $0x1] sm:$0xff]  ;;  %s644_s12 = smov 32   ;;  %v288_v20 = vrot.slane %v719_v13, 7  ;;  %vm55_vm3 = vcmask 1040384  }
  0x2c   :  { %231 = vrot.lane.b32.xlu0 %v227_v6, %s642_s10  ;;  %80 = vst.msk [vmem:[#allocation2 + $0x8] sm:$0xff] %vm63_vm2, %v78_v19  ;;  %v239_v21 = vld [vmem:[#allocation3 + $0x41] sm:$0xff]  ;;  %v271_v22 = vld [vmem:[#allocation3 + $0x51] sm:$0xff]  ;;  %v518_v23 = vpack.c.bf16 %v374_v18, %v373_v17  ;;  %s645_s13 = smov 96   ;;  %s646_s14 = smov 48   ;;  %vm81_vm4 = vcmask 129024  }
  0x2d   :  { %516 = vmatpush1.bf16.msra.mxu0 %v515_v16  ;;  %562 = vmatpush1.bf16.msra.mxu1 %v515_v16  ;;  %241 = vst.msk [vmem:[#allocation2 + $0x28] sm:$0xff] %vm63_vm2, %v239_v21  ;;  %v52_v24 = vld [vmem:[#allocation3 + $0x8] sm:$0x7f]  ;;  %v375_v25 = vld [vmem:[#allocation5 + $0x20] sm:$0xff]  ;;  %v377_v34 = vld [vmem:[#allocation5 + $0x30] sm:$0xff]  ;;  %s647_s15 = smov 112  }
  0x2e   :  { %517 = vmatprep.subr.bf16.mxu0 %v640_v1  ;;  %551 = vmatprep.subr.bf16.mxu1 %v640_v1  ;;  %v376_v26 = vld [vmem:[#allocation5 + $0x28] sm:$0xff]  ;;  %v57_v27 = vrot.slane %v52_v24, 7  ;;  %v378_v35 = vld [vmem:[#allocation5 + $0x38] sm:$0xff]  ;;  %v379_v40 = vld [vmem:[#allocation5 + $0x40] sm:$0xff]  ;;  %vm75_vm5 = vcmask 654848   ;;  %vm97_vm6 = vcmask 261249  }
  0x2f   :  { %251 = vrot.lane.b32.xlu1 %v248_v9, %s643_s11  ;;  %v217_v28 = vld [vmem:[#allocation3 + $0x48] sm:$0x7f]  ;;  %v521_v32 = vpack.c.bf16 %v376_v26, %v375_v25  ;;  %v524_v38 = vpack.c.bf16 %v378_v35, %v377_v34  ;;  %v85_v39 = vld [vmem:[#allocation3 + $0x18] sm:$0x7f]  ;;  %v747_v43 = vld [vmem:[#allocation3 + $0x30] sm:$0xff]  ;;  %vm111_vm7 = vcmask 786048  }
  0x30   :  { %105 = vrot.lane.b32.xlu0 %v700_v4, %s641_s1  ;;  %v221_v29 = vrot.slane %v217_v28, 7  ;;  %v58_v30 = vsel %vm55_vm3, %v56_v7, %v57_v27  ;;  %v66_v31 = vld [vmem:[#allocation3 + $0x8] sm:$0xff]  ;;  %v89_v44 = vrot.slane %v85_v39, 7  ;;  %v245_v46 = vld [vmem:[#allocation3 + $0x58] sm:$0x7f]  ;;  %v381_v47 = vld [vmem:[#allocation5 + $0x50] sm:$0xff] }
  0x31   :  { %519 = vmatpush1.bf16.msra.mxu0 %v518_v23  ;;  %563 = vmatpush1.bf16.msra.mxu1 %v518_v23  ;;  %64 = vst.msk [vmem:[#allocation2 + $0x10] sm:$0xff] %vm63_vm2, %v58_v30  ;;  %v228_v36 = vld [vmem:[#allocation3 + $0x48] sm:$0xff]  ;;  %v382_v48 = vld [vmem:[#allocation5 + $0x58] sm:$0xff]  ;;  %v176_v49 = vrot.slane %v747_v43, 7  ;;  %v249_v51 = vrot.slane %v245_v46, 7  ;;  %v383_v53 = vld [vmem:[#allocation5 + $0x60] sm:$0xff] }
  0x32   :  { %v222_v33 = vsel %vm55_vm3, %v220_v8, %v221_v29  ;;  %520 = vmatprep.subr.bf16.mxu0 %v640_v1  ;;  %552 = vmatprep.subr.bf16.mxu1 %v640_v1  ;;  %v158_v37 = vld [vmem:[#allocation3 + $0x21] sm:$0xff]  ;;  %v90_v50 = vsel %vm55_vm3, %v88_v5, %v89_v44  ;;  %v530_v52 = vpack.c.bf16 %v382_v48, %v381_v47  ;;  %v202_v56 = vld [vmem:[#allocation3 + $0x31] sm:$0xff]  ;;  %v79_v0 = vld [vmem:[#allocation3 + $0x9] sm:$0x7f]  ;;  %vm141_vm8 = vcmask 392449  }
  0x33   :  { %135 = vrot.lane.b32.xlu1 %v132_v11, %s644_s12  ;;  %226 = vst.msk [vmem:[#allocation2 + $0x30] sm:$0xff] %vm63_vm2, %v222_v33  ;;  %v380_v41 = vld [vmem:[#allocation5 + $0x48] sm:$0xff]  ;;  %v250_v55 = vsel %vm55_vm3, %v248_v9, %v249_v51  ;;  %v767_v57 = vld [vmem:[#allocation3 + $0x70] sm:$0xff]  ;;  %v386_v60 = vld [vmem:[#allocation5 + $0x78] sm:$0xff]  ;;  %vm99_vm9 = vcmask 261248   ;;  %vm155_vm10 = vcmask 917248  }
  0x34   :  { %118 = vrot.lane.b32.xlu0 %v114_v12, %s643_s11  ;;  %v311_v42 = vld [vmem:[#allocation3 + $0x61] sm:$0xff]  ;;  %v527_v45 = vpack.c.bf16 %v380_v41, %v379_v40  ;;  %v385_v59 = vld [vmem:[#allocation5 + $0x70] sm:$0xff]  ;;  %v328_v61 = vrot.slane %v767_v57, 7  ;;  %82 = vst.msk [vmem:[#allocation2 + $0x18] sm:$0x7f] %vm81_vm4, %v79_v0  ;;  %v102_v4 = vld [vmem:[#allocation3 + $0x18] sm:$0xff] }
  0x35   :  { %522 = vmatpush1.bf16.msra.mxu0 %v521_v32  ;;  %564 = vmatpush1.bf16.msra.mxu1 %v521_v32  ;;  %v384_v54 = vld [vmem:[#allocation5 + $0x68] sm:$0xff]  ;;  %v351_v62 = vld [vmem:[#allocation3 + $0x71] sm:$0xff]  ;;  %v536_v63 = vpack.c.bf16 %v386_v60, %v385_v59  ;;  %v387_v2 = vld [vmem:[#allocation5 + $0x80] sm:$0xff]  ;;  %vm143_vm11 = vcmask 392448   ;;  %vm185_vm12 = vcmask 523649   ;;  %vm187_vm13 = vcmask 523648  }
  0x36   :  { %523 = vmatprep.subr.bf16.mxu0 %v640_v1  ;;  %553 = vmatprep.subr.bf16.mxu1 %v640_v1  ;;  %v533_v58 = vpack.c.bf16 %v384_v54, %v383_v53  ;;  %v388_v3 = vld [vmem:[#allocation5 + $0x88] sm:$0xff]  ;;  %v389_v8 = vld [vmem:[#allocation5 + $0x90] sm:$0xff]  ;;  %v390_v9 = vld [vmem:[#allocation5 + $0x98] sm:$0xff]  ;;  %vm199_vm14 = vcmask 1048448   ;;  %vm125_vm15 = vcmask 260224   ;;  %vm169_vm1 = vcmask 391424  }
  0x37   :  { %291 = vrot.lane.b32.xlu1 %v288_v20, %s644_s12  ;;  %v539_v5 = vpack.c.bf16 %v388_v3, %v387_v2  ;;  %v240_v6 = vld [vmem:[#allocation3 + $0x49] sm:$0x7f]  ;;  %v260_v12 = vld [vmem:[#allocation3 + $0x58] sm:$0xff]  ;;  %v542_v15 = vpack.c.bf16 %v390_v9, %v389_v8  ;;  %v391_v17 = vld [vmem:[#allocation5 + $0xa0] sm:$0xff]  ;;  %vm213_vm2 = vcmask 522624  }
  0x38   :  { %275 = vrot.lane.b32.xlu0 %v271_v22, %s643_s11  ;;  %v129_v7 = vld [vmem:[#allocation3 + $0x28] sm:$0x7f]  ;;  %242 = vst.msk [vmem:[#allocation2 + $0x38] sm:$0x7f] %vm81_vm4, %v240_v6  ;;  %v115_v21 = vld [vmem:[#allocation3 + $0x19] sm:$0x7f] }
  0x39   :  { %525 = vmatpush1.bf16.msra.mxu0 %v524_v38  ;;  %565 = vmatpush1.bf16.msra.mxu1 %v524_v38  ;;  %v133_v14 = vrot.slane %v129_v7, 7  ;;  %v285_v16 = vld [vmem:[#allocation3 + $0x68] sm:$0x7f]  ;;  %v393_v24 = vld [vmem:[#allocation5 + $0xb0] sm:$0xff]  ;;  %v394_v25 = vld [vmem:[#allocation5 + $0xb8] sm:$0xff] }
  0x3a   :  { %526 = vmatprep.subr.bf16.mxu0 %v640_v1  ;;  %554 = vmatprep.subr.bf16.mxu1 %v640_v1  ;;  %v392_v18 = vld [vmem:[#allocation5 + $0xa8] sm:$0xff]  ;;  %v289_v22 = vrot.slane %v285_v16, 7  ;;  %v548_v26 = vpack.c.bf16 %v394_v25, %v393_v24  ;;  %v173_v29 = vld [vmem:[#allocation3 + $0x38] sm:$0x7f] }
  0x3b   :  { %149 = vrot.lane.b32.xlu1 %v711_v10, %s645_s13  ;;  %v134_v19 = vsel %vm55_vm3, %v132_v11, %v133_v14  ;;  %v545_v23 = vpack.c.bf16 %v392_v18, %v391_v17  ;;  %v272_v11 = vld [vmem:[#allocation3 + $0x59] sm:$0x7f]  ;;  %v159_v27 = vld [vmem:[#allocation3 + $0x29] sm:$0x7f]  ;;  %v177_v30 = vrot.slane %v173_v29, 7 }
  0x3c   :  { %71 = vrot.lane.b32.xlu0 %v66_v31, %s642_s10  ;;  %v290_v10 = vsel %vm55_vm3, %v288_v20, %v289_v22  ;;  %v146_v28 = vld [vmem:[#allocation3 + $0x28] sm:$0xff]  ;;  %v325_v31 = vld [vmem:[#allocation3 + $0x78] sm:$0x7f] }
  0x3d   :  { %528 = vmatpush1.bf16.msra.mxu0 %v527_v45  ;;  %566 = vmatpush1.bf16.msra.mxu1 %v527_v45  ;;  %v300_v20 = vld [vmem:[#allocation3 + $0x68] sm:$0xff]  ;;  %v178_v32 = vsel %vm55_vm3, %v176_v49, %v177_v30  ;;  %v329_v33 = vrot.slane %v325_v31, 7  ;;  %v352_v34 = vld [vmem:[#allocation3 + $0x79] sm:$0x7f] }
  0x3e   :  { %529 = vmatprep.subr.bf16.mxu0 %v640_v1  ;;  %555 = vmatprep.subr.bf16.mxu1 %v640_v1 }
  0x3f   :  { %233 = vrot.lane.b32.xlu1 %v228_v36, %s642_s10  ;;  %v330_v35 = vsel %vm55_vm3, %v328_v61, %v329_v33  ;;  %v340_v36 = vld [vmem:[#allocation3 + $0x78] sm:$0xff] }
  0x40   :  { %162 = vrot.lane.b32.xlu0 %v158_v37, %s644_s12  ;;  %v190_v37 = vld [vmem:[#allocation3 + $0x38] sm:$0xff] }
  0x41   :  { %531 = vmatpush1.bf16.msra.mxu0 %v530_v52  ;;  %567 = vmatpush1.bf16.msra.mxu1 %v530_v52 }
  0x42   :  { %532 = vmatprep.subr.bf16.mxu0 %v640_v1  ;;  %556 = vmatprep.subr.bf16.mxu1 %v640_v1 }
  0x43   :  { %315 = vrot.lane.b32.xlu1 %v311_v42, %s644_s12 }
  0x44   :  { %303 = vrot.lane.b32.xlu0 %v719_v13, %s645_s13  ;;  %v312_v13 = vld [vmem:[#allocation3 + $0x69] sm:$0x7f] }
  0x45   :  { %534 = vmatpush1.bf16.msra.mxu0 %v533_v58  ;;  %568 = vmatpush1.bf16.msra.mxu1 %v533_v58 }
  0x46   :  { %535 = vmatprep.subr.bf16.mxu0 %v640_v1  ;;  %557 = vmatprep.subr.bf16.mxu1 %v640_v1 }
  0x47   :  { %179 = vrot.lane.b32.xlu1 %v176_v49, %s646_s14 }
  0x48   :  { %93 = vrot.lane.b32.xlu0 %v90_v50, %s643_s11 }
  0x49   :  { %537 = vmatpush1.bf16.msra.mxu0 %v536_v63  ;;  %569 = vmatpush1.bf16.msra.mxu1 %v536_v63 }
  0x4a   :  { %538 = vmatprep.subr.bf16.mxu0 %v640_v1  ;;  %558 = vmatprep.subr.bf16.mxu1 %v640_v1 }
  0x4b   :  { %253 = vrot.lane.b32.xlu1 %v250_v55, %s643_s11 }
  0x4c   :  { %206 = vrot.lane.b32.xlu0 %v202_v56, %s646_s14 }
  0x4d   :  { %540 = vmatpush1.bf16.msra.mxu0 %v539_v5  ;;  %570 = vmatpush1.bf16.msra.mxu1 %v539_v5 }
  0x4e   :  { %541 = vmatprep.subr.bf16.mxu0 %v640_v1  ;;  %559 = vmatprep.subr.bf16.mxu1 %v640_v1 }
  0x4f   :  { %355 = vrot.lane.b32.xlu1 %v351_v62, %s646_s14 }
  0x50   :  { %331 = vrot.lane.b32.xlu0 %v328_v61, %s646_s14 }
  0x51   :  { %543 = vmatpush1.bf16.msra.mxu0 %v542_v15  ;;  %571 = vmatpush1.bf16.msra.mxu1 %v542_v15 }
  0x52   :  { %544 = vmatprep.subr.bf16.mxu0 %v640_v1  ;;  %560 = vmatprep.subr.bf16.mxu1 %v640_v1 }
  0x53   :  { %193 = vrot.lane.b32.xlu1 %v747_v43, %s647_s15 }
  0x54   :  { %107 = vrot.lane.b32.xlu0 %v102_v4, %s641_s1 }
  0x55   :  { %546 = vmatpush1.bf16.msra.mxu0 %v545_v23  ;;  %572 = vmatpush1.bf16.msra.mxu1 %v545_v23 }
  0x56   :  { %547 = vmatprep.subr.bf16.mxu0 %v640_v1  ;;  %561 = vmatprep.subr.bf16.mxu1 %v640_v1  ;;  %v203_v1 = vld [vmem:[#allocation3 + $0x39] sm:$0x7f] }
  0x57   :  { %343 = vrot.lane.b32.xlu1 %v767_v57, %s647_s15 }
  0x58   :  { %265 = vrot.lane.b32.xlu0 %v260_v12, %s641_s1 }
  0x59   :  { %549 = vmatpush1.bf16.msra.mxu0 %v548_v26  ;;  %573 = vmatpush1.bf16.msra.mxu1 %v548_v26 }
  0x5b   :  { %137 = vrot.lane.b32.xlu1 %v134_v19, %s644_s12 }
  0x5c   :  { %120 = vrot.lane.b32.xlu0 %v115_v21, %s643_s11 }
  0x5f   :  { %293 = vrot.lane.b32.xlu1 %v290_v10, %s644_s12 }
  0x60   :  { %277 = vrot.lane.b32.xlu0 %v272_v11, %s643_s11  ;;  %v509_v11 = vld [vmem:[%s871_s2] ss:$0 sm:$0xff] }
  0x63   :  { %164 = vrot.lane.b32.xlu1 %v159_v27, %s644_s12 }
  0x64   :  { %151 = vrot.lane.b32.xlu0 %v146_v28, %s645_s13 }
  0x67   :  { %317 = vrot.lane.b32.xlu1 %v312_v13, %s644_s12 }
  0x68   :  { %305 = vrot.lane.b32.xlu0 %v300_v20, %s645_s13 }
  0x6b   :  { %208 = vrot.lane.b32.xlu1 %v203_v1, %s646_s14 }
  0x6c   :  { %181 = vrot.lane.b32.xlu0 %v178_v32, %s646_s14 }
  0x6f   :  { %357 = vrot.lane.b32.xlu1 %v352_v34, %s646_s14 }
  0x70   :  { %333 = vrot.lane.b32.xlu0 %v330_v35, %s646_s14 }
  0x73   :  { %345 = vrot.lane.b32.xlu1 %v340_v36, %s647_s15 }
  0x74   :  { %195 = vrot.lane.b32.xlu0 %v190_v37, %s647_s15 }
  0x99   :  { %v264_v38 = vpop.permute.xlu1 %263 }
  0x9a   :  { %v70_v39 = vpop.permute.xlu0 %69 }
  0x9b   :  { %76 = vst.msk [vmem:[#allocation2] sm:$0xff] %vm75_vm5, %v70_v39 }
  0x9d   :  { %v92_v40 = vpop.permute.xlu1 %91 }
  0x9e   :  { %v232_v41 = vpop.permute.xlu0 %231  ;;  %98 = vst.msk [vmem:[#allocation2] sm:$0xfe] %vm97_vm6, %v92_v40 }
  0x9f   :  { %237 = vst.msk [vmem:[#allocation2 + $0x20] sm:$0xff] %vm75_vm5, %v232_v41 }
  0xa1   :  { %v252_v42 = vpop.permute.xlu1 %251 }
  0xa2   :  { %v106_v43 = vpop.permute.xlu0 %105  ;;  %257 = vst.msk [vmem:[#allocation2 + $0x20] sm:$0xfe] %vm97_vm6, %v252_v42 }
  0xa3   :  { %112 = vst.msk [vmem:[#allocation2] sm:$0xff] %vm111_vm7, %v106_v43  ;;  %269 = vst.msk [vmem:[#allocation2 + $0x20] sm:$0xff] %vm111_vm7, %v264_v38 }
  0xa5   :  { %v136_v44 = vpop.permute.xlu1 %135 }
  0xa6   :  { %v119_v45 = vpop.permute.xlu0 %118  ;;  %142 = vst.msk [vmem:[#allocation2] sm:$0xfe] %vm141_vm8, %v136_v44 }
  0xa7   :  { %124 = vst.msk [vmem:[#allocation2 + $0x8] sm:$0xff] %vm99_vm9, %v119_v45 }
  0xa9   :  { %v292_v46 = vpop.permute.xlu1 %291 }
  0xaa   :  { %v276_v47 = vpop.permute.xlu0 %275  ;;  %297 = vst.msk [vmem:[#allocation2 + $0x20] sm:$0xfe] %vm141_vm8, %v292_v46 }
  0xab   :  { %281 = vst.msk [vmem:[#allocation2 + $0x28] sm:$0xff] %vm99_vm9, %v276_v47 }
  0xad   :  { %v150_v48 = vpop.permute.xlu1 %149 }
  0xae   :  { %v72_v49 = vpop.permute.xlu0 %71  ;;  %156 = vst.msk [vmem:[#allocation2] sm:$0xff] %vm155_vm10, %v150_v48 }
  0xaf   :  { %77 = vst.msk [vmem:[#allocation2 + $0x10] sm:$0xff] %vm75_vm5, %v72_v49 }
  0xb1   :  { %v234_v50 = vpop.permute.xlu1 %233 }
  0xb2   :  { %v163_v51 = vpop.permute.xlu0 %162  ;;  %238 = vst.msk [vmem:[#allocation2 + $0x30] sm:$0xff] %vm75_vm5, %v234_v50 }
  0xb3   :  { %168 = vst.msk [vmem:[#allocation2 + $0x8] sm:$0xff] %vm143_vm11, %v163_v51 }
  0xb5   :  { %v316_v52 = vpop.permute.xlu1 %315 }
  0xb6   :  { %v304_v53 = vpop.permute.xlu0 %303  ;;  %321 = vst.msk [vmem:[#allocation2 + $0x28] sm:$0xff] %vm143_vm11, %v316_v52 }
  0xb7   :  { %309 = vst.msk [vmem:[#allocation2 + $0x20] sm:$0xff] %vm155_vm10, %v304_v53 }
  0xb9   :  { %v180_v54 = vpop.permute.xlu1 %179 }
  0xba   :  { %v94_v55 = vpop.permute.xlu0 %93  ;;  %186 = vst.msk [vmem:[#allocation2] sm:$0xfe] %vm185_vm12, %v180_v54 }
  0xbb   :  { %100 = vst.msk [vmem:[#allocation2 + $0x10] sm:$0xff] %vm99_vm9, %v94_v55 }
  0xbd   :  { %v254_v56 = vpop.permute.xlu1 %253 }
  0xbe   :  { %v207_v57 = vpop.permute.xlu0 %206  ;;  %258 = vst.msk [vmem:[#allocation2 + $0x30] sm:$0xff] %vm99_vm9, %v254_v56 }
  0xbf   :  { %212 = vst.msk [vmem:[#allocation2 + $0x8] sm:$0xff] %vm187_vm13, %v207_v57 }
  0xc1   :  { %v356_v58 = vpop.permute.xlu1 %355 }
  0xc2   :  { %v332_v59 = vpop.permute.xlu0 %331  ;;  %361 = vst.msk [vmem:[#allocation2 + $0x28] sm:$0xff] %vm187_vm13, %v356_v58 }
  0xc3   :  { %337 = vst.msk [vmem:[#allocation2 + $0x20] sm:$0xfe] %vm185_vm12, %v332_v59 }
  0xc5   :  { %v194_v60 = vpop.permute.xlu1 %193 }
  0xc6   :  { %v108_v61 = vpop.permute.xlu0 %107  ;;  %v364_v62 = vld [vmem:[#allocation2 + $0x8] sm:$0xff]  ;;  %200 = vst.msk [vmem:[#allocation2] sm:$0xff] %vm199_vm14, %v194_v60 }
  0xc7   :  { %113 = vst.msk [vmem:[#allocation2 + $0x10] sm:$0xff] %vm111_vm7, %v108_v61  ;;  %510 = vmatprep.mubr.msk.f32.mxu0 %vm43_vm0, %v364_v62 }
  0xc9   :  { %v344_v63 = vpop.permute.xlu1 %343  ;;  %v368_v2 = vld [vmem:[#allocation2 + $0x28] sm:$0xff] }
  0xca   :  { %v266_v0 = vpop.permute.xlu0 %265  ;;  %349 = vst.msk [vmem:[#allocation2 + $0x20] sm:$0xff] %vm199_vm14, %v344_v63  ;;  %512 = vmatprep.mubr.msk.f32.mxu1 %vm43_vm0, %v368_v2 }
  0xcb   :  { %270 = vst.msk [vmem:[#allocation2 + $0x30] sm:$0xff] %vm111_vm7, %v266_v0 }
  0xcd   :  { %v138_v3 = vpop.permute.xlu1 %137  ;;  %v363_v5 = vld [vmem:[#allocation2] sm:$0xff] }
  0xce   :  { %v121_v4 = vpop.permute.xlu0 %120  ;;  %144 = vst.msk [vmem:[#allocation2 + $0x10] sm:$0xff] %vm143_vm11, %v138_v3  ;;  %479 = vmatmul.mubr.f32.vlgmr.msra.gmra.mrb[0].mxu0 %v363_v5 }
  0xcf   :  { %126 = vst.msk [vmem:[#allocation2 + $0x18] sm:$0x7f] %vm125_vm15, %v121_v4 }
  0xd1   :  { %v294_v6 = vpop.permute.xlu1 %293  ;;  %v367_v8 = vld [vmem:[#allocation2 + $0x20] sm:$0xff] }
  0xd2   :  { %v278_v7 = vpop.permute.xlu0 %277  ;;  %298 = vst.msk [vmem:[#allocation2 + $0x30] sm:$0xff] %vm143_vm11, %v294_v6  ;;  %489 = vmatmul.mubr.f32.vlgmr.msra.gmra.mrb[0].mxu1 %v367_v8 }
  0xd3   :  { %282 = vst.msk [vmem:[#allocation2 + $0x38] sm:$0x7f] %vm125_vm15, %v278_v7 }
  0xd5   :  { %v165_v9 = vpop.permute.xlu1 %164 }
  0xd6   :  { %v152_v12 = vpop.permute.xlu0 %151  ;;  %170 = vst.msk [vmem:[#allocation2 + $0x18] sm:$0x7f] %vm169_vm1, %v165_v9 }
  0xd7   :  { %157 = vst.msk [vmem:[#allocation2 + $0x10] sm:$0xff] %vm155_vm10, %v152_v12 }
  0xd9   :  { %v318_v14 = vpop.permute.xlu1 %317 }
  0xda   :  { %v306_v15 = vpop.permute.xlu0 %305  ;;  %322 = vst.msk [vmem:[#allocation2 + $0x38] sm:$0x7f] %vm169_vm1, %v318_v14 }
  0xdb   :  { %310 = vst.msk [vmem:[#allocation2 + $0x30] sm:$0xff] %vm155_vm10, %v306_v15 }
  0xdd   :  { %v209_v16 = vpop.permute.xlu1 %208 }
  0xde   :  { %v182_v17 = vpop.permute.xlu0 %181  ;;  %214 = vst.msk [vmem:[#allocation2 + $0x18] sm:$0x7f] %vm213_vm2, %v209_v16 }
  0xdf   :  { %188 = vst.msk [vmem:[#allocation2 + $0x10] sm:$0xff] %vm187_vm13, %v182_v17 }
  0xe1   :  { %v358_v18 = vpop.permute.xlu1 %357 }
  0xe2   :  { %v334_v19 = vpop.permute.xlu0 %333  ;;  %362 = vst.msk [vmem:[#allocation2 + $0x38] sm:$0x7f] %vm213_vm2, %v358_v18 }
  0xe3   :  { %338 = vst.msk [vmem:[#allocation2 + $0x30] sm:$0xff] %vm187_vm13, %v334_v19 }
  0xe5   :  { %v346_v21 = vpop.permute.xlu1 %345  ;;  %v366_v23 = vld [vmem:[#allocation2 + $0x18] sm:$0xff] }
  0xe6   :  { %v196_v22 = vpop.permute.xlu0 %195  ;;  %350 = vst.msk [vmem:[#allocation2 + $0x30] sm:$0xff] %vm199_vm14, %v346_v21  ;;  %511 = vmatprep.mubr.msk.f32.mxu0 %vm43_vm0, %v366_v23 }
  0xe7   :  { %201 = vst.msk [vmem:[#allocation2 + $0x10] sm:$0xff] %vm199_vm14, %v196_v22 }
  0xe9   :  { %v370_v24 = vld [vmem:[#allocation2 + $0x38] sm:$0xff] }
  0xea   :  { %513 = vmatprep.mubr.msk.f32.mxu1 %vm43_vm0, %v370_v24 }
  0xed   :  { %v369_v10 = vld [vmem:[#allocation2 + $0x30] sm:$0xff] }
  0xee   :  { %v365_v25 = vld [vmem:[#allocation2 + $0x10] sm:$0xff]  ;;  %494 = vmatmul.mubr.f32.gmra.mrb[2].mxu1 %v369_v10 }
  0xef   :  { %484 = vmatmul.mubr.f32.gmra.mrb[2].mxu0 %v365_v25 }
 0x1a1   :  { %v480_v26 = vpop.f32.mrb[0].mxu0 }
 0x1a2   :  { %v481_v27 = vadd.f32 %v509_v11, %v480_v26  ;;  %v482_v28 = vpop.f32.mrb[1].mxu0 }
 0x1a4   :  { %499 = vst [vmem:[%s872_s3] sm:$0xff] %v481_v27 }
 0x1a5   :  { %v490_v29 = vpop.f32.mrb[0].mxu1 }
 0x1a6   :  { %v491_v13 = vadd.f32 %v509_v11, %v490_v29  ;;  %v492_v20 = vpop.f32.mrb[1].mxu1 }
 0x1a8   :  { %501 = vst [vmem:[%s872_s3 + $0x10] sm:$0xff] %v491_v13 }
 0x1c1   :  { %v495_v31 = vpop.f32.mrb[2].mxu1 }
 0x1c2   :  { %v485_v30 = vpop.f32.mrb[2].mxu0  ;;  %v496_v32 = vadd.f32 %v509_v11, %v495_v31  ;;  %v497_v34 = vpop.f32.mrb[3].mxu1 }
 0x1c3   :  { %v486_v1 = vadd.f32 %v509_v11, %v485_v30  ;;  %v487_v33 = vpop.f32.mrb[3].mxu0 }
 0x1c4   :  { %502 = vst [vmem:[%s872_s3 + $0x18] sm:$0xff] %v496_v32 }
 0x1c5   :  { %500 = vst [vmem:[%s872_s3 + $0x8] sm:$0xff] %v486_v1 }
 0x1c6   :  { %507 = vsyncpa [#allocation4], 1 }
 0x1c7   :  { %508 = vsyncpa [#allocation6], 1 }

</bundles_post_ra>
